<compile_context>
chip_gen: v5e
topology: v5e:2x2
jax: 0.10.0
libtpu: 0.0.40
codegen_flags: <defaults>
</compile_context>

<pallas_src>
import functools

import jax
import jax.numpy as jnp
from jax import lax
from jax.experimental import pallas as pl
from jax.experimental.pallas import tpu as pltpu

_LANES = 128


def _focal_loss_kernel(x_ref, y_ref, o_ref, acc_ref, *, a0, a1, gamma, n_valid):
    i = pl.program_id(0)        # parallel shard (one per TC on v7x)
    k = pl.program_id(1)        # reduction step within this shard
    nk = pl.num_programs(1)

    @pl.when(k == 0)
    def _():
        acc_ref[...] = jnp.zeros_like(acc_ref)

    x = x_ref[...].astype(jnp.float32)
    y = y_ref[...].astype(jnp.float32)

    # Shared transcendental t = log1p(exp(-|x|)).
    # For hard labels y in {0,1}: |z| == |x| with z = -x*(2y-1), so
    #   logsigmoid(z)              = min(z, 0) - t
    #   bce_with_logits(x, y)      = max(x, 0) - x*y + t
    # (reuse assumes hard {0,1} labels, which this module targets).
    t = jnp.log1p(jnp.exp(-jnp.abs(x)))
    z = -x * (y * 2.0 - 1.0)
    pt_log = jnp.minimum(z, 0.0) - t

    # at = (alpha*y + (1-alpha)*(1-y)) * 2  ==  a1*y + a0  (constants folded)
    at = a1 * y + a0
    w = at * jnp.exp(pt_log * gamma)          # .detach() is a no-op in forward

    bce = jnp.maximum(x, 0.0) - x * y + t

    # Exact masking of the zero-padded tail (based on global flat index).
    tr, lanes = x_ref.shape
    base_row = (i * nk + k) * tr
    r = lax.broadcasted_iota(jnp.int32, (tr, lanes), 0)
    l = lax.broadcasted_iota(jnp.int32, (tr, lanes), 1)
    idx = (base_row + r) * lanes + l
    acc_ref[...] += jnp.where(idx < n_valid, w * bce, 0.0)

    @pl.when(k == nk - 1)
    def _():
        # Sublane-only reduction here; the tiny cross-lane finish happens in
        # the JAX wrapper (lane-dense output block -> unmasked stores).
        o_ref[...] = jnp.sum(acc_ref[...], axis=0, keepdims=True)


def focal_loss(x, y, alpha=0.25, gamma=2.0, *, max_tile_rows=512, num_shards=2):
    """Focal loss over 1-D logits x [N] and hard labels y [N] (0/1)."""
    assert 0.0 < alpha < 1.0
    n = x.shape[0]
    rows_raw = pl.cdiv(n, _LANES)

    # Tile rows: multiple of 16 (bf16 sublane packing; also fine for f32),
    # capped at max_tile_rows so buffers stay small enough to double-buffer on
    # every generation (incl. v7x's 64 MiB physical / 32 MiB scoped VMEM).
    t_rows = ((pl.cdiv(rows_raw, num_shards) + 15) // 16) * 16
    t_rows = max(16, min(max_tile_rows, t_rows))
    k_tiles = pl.cdiv(rows_raw, num_shards * t_rows)
    rows_pad = num_shards * k_tiles * t_rows
    n_pad = rows_pad * _LANES

    # Keep x in its incoming dtype; labels are hard {0,1} so bf16 is exact and
    # halves y's HBM traffic (kernel upcasts to f32 for compute).
    xf = jnp.pad(x.reshape(-1), (0, n_pad - n)).reshape(rows_pad, _LANES)
    yf = jnp.pad(y.reshape(-1).astype(jnp.bfloat16), (0, n_pad - n)).reshape(
        rows_pad, _LANES)

    kernel = functools.partial(
        _focal_loss_kernel,
        a0=float(2.0 * (1.0 - alpha)),
        a1=float(2.0 * (2.0 * alpha - 1.0)),
        gamma=float(gamma),
        n_valid=int(n),
    )

    partials = pl.pallas_call(
        kernel,
        out_shape=jax.ShapeDtypeStruct((1, num_shards * _LANES), jnp.float32),
        grid_spec=pltpu.PrefetchScalarGridSpec(
            num_scalar_prefetch=0,
            grid=(num_shards, k_tiles),
            in_specs=[
                pl.BlockSpec((t_rows, _LANES),
                             lambda i, k, K=k_tiles: (i * K + k, 0)),
                pl.BlockSpec((t_rows, _LANES),
                             lambda i, k, K=k_tiles: (i * K + k, 0)),
            ],
            out_specs=pl.BlockSpec((1, _LANES), lambda i, k: (0, i)),
            scratch_shapes=[pltpu.VMEM((t_rows, _LANES), jnp.float32)],
        ),
        compiler_params=pltpu.CompilerParams(
            dimension_semantics=("parallel", "arbitrary")),
    )(xf, yf)

    # Tiny cross-lane finish + mean normalization outside the kernel.
    return jnp.sum(partials) / jnp.float32(n)


def _focal_loss_ref(x, y, alpha=0.25, gamma=2.0):
    """Pure-JAX reference mirroring the PyTorch forward exactly."""
    y = y.astype(jnp.float32)
    z = -x * (y * 2.0 - 1.0)
    pt_log = jnp.minimum(z, 0.0) - jnp.log1p(jnp.exp(-jnp.abs(z)))
    at = (alpha * y + (1.0 - alpha) * (1.0 - y)) * 2.0
    w = at * jnp.exp(pt_log * gamma)
    bce = jnp.maximum(x, 0.0) - x * y + jnp.log1p(jnp.exp(-jnp.abs(x)))
    return jnp.mean(w * bce)


if __name__ == "__main__":
    key = jax.random.PRNGKey(0)
    kx, ky = jax.random.split(key)

    N = 1000  # deliberately not a multiple of 128 to exercise padding/masking
    x = jax.random.normal(kx, (N,), dtype=jnp.float32) * 2.0
    y = jax.random.bernoulli(ky, p=0.3, shape=(N,)).astype(jnp.float32)

    alpha, gamma = 0.25, 2.0

    loss = jax.block_until_ready(focal_loss(x, y, alpha=alpha, gamma=gamma))
    ref = _focal_loss_ref(x, y, alpha=alpha, gamma=gamma)
    assert jnp.allclose(loss, ref, rtol=1e-5, atol=1e-6), (loss, ref)

    print("KERNEL_OK")
</pallas_src>

<mosaic_0001>
module attributes {stable_mosaic.version = 11 : i64} {
  func.func @_focal_loss_kernel(%arg0: i32, %arg1: i32, %arg2: memref<16x128xf32, #tpu.memory_space<vmem>>, %arg3: memref<16x128xbf16, #tpu.memory_space<vmem>>, %arg4: memref<1x128xf32, #tpu.memory_space<vmem>>, %arg5: memref<16x128xf32, #tpu.memory_space<vmem>>) attributes {dimension_semantics = [#tpu.dimension_semantics<parallel>, #tpu.dimension_semantics<arbitrary>], iteration_bounds = array<i64: 2, 1>, scalar_prefetch = 0 : i64, scratch_operands = 1 : i64, tpu.core_type = #tpu.core_type<tc>, window_params = [{transform_indices = @transform_0, window_bounds = array<i64: 16, 128>}, {transform_indices = @transform_1, window_bounds = array<i64: 16, 128>}, {transform_indices = @transform_2, window_bounds = array<i64: 1, 128>}]} {
    %c0_i32 = arith.constant 0 : i32
    %0 = arith.cmpi eq, %arg1, %c0_i32 : i32
    %1 = arith.extui %0 : i1 to i32
    %c0_i32_0 = arith.constant 0 : i32
    %2 = arith.cmpi ne, %1, %c0_i32_0 : i32
    scf.if %2 {
      %cst_19 = arith.constant 0.000000e+00 : f32
      %55 = vector.broadcast %cst_19 : f32 to vector<16x128xf32>
      %c0_20 = arith.constant 0 : index
      %c0_21 = arith.constant 0 : index
      %56 = vector.load %arg5[%c0_20, %c0_21] : memref<16x128xf32, #tpu.memory_space<vmem>>, vector<16x128xf32>
      tpu.vector_store %arg5[%c0_20, %c0_21], %55 {strides = array<i32>} : memref<16x128xf32, #tpu.memory_space<vmem>>, vector<16x128xf32>,
    } else {
    }
    %c0 = arith.constant 0 : index
    %c0_1 = arith.constant 0 : index
    %3 = vector.load %arg2[%c0, %c0_1] : memref<16x128xf32, #tpu.memory_space<vmem>>, vector<16x128xf32>
    %c0_2 = arith.constant 0 : index
    %c0_3 = arith.constant 0 : index
    %4 = vector.load %arg3[%c0_2, %c0_3] : memref<16x128xbf16, #tpu.memory_space<vmem>>, vector<16x128xbf16>
    %5 = arith.extf %4 : vector<16x128xbf16> to vector<16x128xf32>
    %6 = math.absf %3 : vector<16x128xf32>
    %cst = arith.constant 0.000000e+00 : f32
    %7 = vector.broadcast %cst : f32 to vector<16x128xf32>
    %8 = arith.subf %7, %6 : vector<16x128xf32>
    %9 = math.exp %8 : vector<16x128xf32>
    %10 = math.log1p %9 : vector<16x128xf32>
    %cst_4 = arith.constant 0.000000e+00 : f32
    %11 = vector.broadcast %cst_4 : f32 to vector<16x128xf32>
    %12 = arith.subf %11, %3 : vector<16x128xf32>
    %cst_5 = arith.constant 2.000000e+00 : f32
    %13 = vector.broadcast %cst_5 : f32 to vector<16x128xf32>
    %14 = arith.mulf %5, %13 : vector<16x128xf32>
    %cst_6 = arith.constant 1.000000e+00 : f32
    %15 = vector.broadcast %cst_6 : f32 to vector<16x128xf32>
    %16 = arith.subf %14, %15 : vector<16x128xf32>
    %17 = arith.mulf %12, %16 : vector<16x128xf32>
    %cst_7 = arith.constant 0.000000e+00 : f32
    %18 = vector.broadcast %cst_7 : f32 to vector<16x128xf32>
    %19 = arith.minimumf %17, %18 : vector<16x128xf32>
    %20 = arith.subf %19, %10 : vector<16x128xf32>
    %cst_8 = arith.constant -1.000000e+00 : f32
    %21 = vector.broadcast %cst_8 : f32 to vector<16x128xf32>
    %22 = arith.mulf %21, %5 : vector<16x128xf32>
    %cst_9 = arith.constant 1.500000e+00 : f32
    %23 = vector.broadcast %cst_9 : f32 to vector<16x128xf32>
    %24 = arith.addf %22, %23 : vector<16x128xf32>
    %cst_10 = arith.constant 2.000000e+00 : f32
    %25 = vector.broadcast %cst_10 : f32 to vector<16x128xf32>
    %26 = arith.mulf %20, %25 : vector<16x128xf32>
    %27 = math.exp %26 : vector<16x128xf32>
    %28 = arith.mulf %24, %27 : vector<16x128xf32>
    %cst_11 = arith.constant 0.000000e+00 : f32
    %29 = vector.broadcast %cst_11 : f32 to vector<16x128xf32>
    %30 = arith.maximumf %3, %29 : vector<16x128xf32>
    %31 = arith.mulf %3, %5 : vector<16x128xf32>
    %32 = arith.subf %30, %31 : vector<16x128xf32>
    %33 = arith.addf %32, %10 : vector<16x128xf32>
    %c1_i32 = arith.constant 1 : i32
    %34 = arith.muli %arg0, %c1_i32 : i32
    %35 = arith.addi %34, %arg1 : i32
    %c16_i32 = arith.constant 16 : i32
    %36 = arith.muli %35, %c16_i32 : i32
    %37 = tpu.iota {dimensions = array<i32: 0>} : vector<16x128xi32>
    %38 = tpu.iota {dimensions = array<i32: 1>} : vector<16x128xi32>
    %39 = vector.broadcast %36 : i32 to vector<16x128xi32>
    %40 = arith.addi %39, %37 : vector<16x128xi32>
    %c128_i32 = arith.constant 128 : i32
    %41 = vector.broadcast %c128_i32 : i32 to vector<16x128xi32>
    %42 = arith.muli %40, %41 : vector<16x128xi32>
    %43 = arith.addi %42, %38 : vector<16x128xi32>
    %c0_12 = arith.constant 0 : index
    %c0_13 = arith.constant 0 : index
    %44 = vector.load %arg5[%c0_12, %c0_13] : memref<16x128xf32, #tpu.memory_space<vmem>>, vector<16x128xf32>
    %c1000_i32 = arith.constant 1000 : i32
    %45 = vector.broadcast %c1000_i32 : i32 to vector<16x128xi32>
    %46 = arith.cmpi slt, %43, %45 : vector<16x128xi32>
    %47 = arith.mulf %28, %33 : vector<16x128xf32>
    %cst_14 = arith.constant 0.000000e+00 : f32
    %48 = vector.broadcast %cst_14 : f32 to vector<16x128xf32>
    %49 = arith.select %46, %47, %48 : vector<16x128xi1>, vector<16x128xf32>
    %50 = arith.addf %44, %49 : vector<16x128xf32>
    %c0_15 = arith.constant 0 : index
    %c0_16 = arith.constant 0 : index
    %51 = vector.load %arg5[%c0_15, %c0_16] : memref<16x128xf32, #tpu.memory_space<vmem>>, vector<16x128xf32>
    tpu.vector_store %arg5[%c0_15, %c0_16], %50 {strides = array<i32>} : memref<16x128xf32, #tpu.memory_space<vmem>>, vector<16x128xf32>,
    %c0_i32_17 = arith.constant 0 : i32
    %52 = arith.cmpi eq, %arg1, %c0_i32_17 : i32
    %53 = arith.extui %52 : i1 to i32
    %c0_i32_18 = arith.constant 0 : i32
    %54 = arith.cmpi ne, %53, %c0_i32_18 : i32
    scf.if %54 {
      %c0_19 = arith.constant 0 : index
      %c0_20 = arith.constant 0 : index
      %55 = vector.load %arg5[%c0_19, %c0_20] : memref<16x128xf32, #tpu.memory_space<vmem>>, vector<16x128xf32>
      %cst_21 = arith.constant dense<0.000000e+00> : vector<128xf32>
      %56 = vector.multi_reduction <add>, %55, %cst_21 [0] : vector<16x128xf32> to vector<128xf32>
      %57 = vector.shape_cast %56 : vector<128xf32> to vector<1x128xf32>
      %c0_22 = arith.constant 0 : index
      %c0_23 = arith.constant 0 : index
      %58 = vector.load %arg4[%c0_22, %c0_23] : memref<1x128xf32, #tpu.memory_space<vmem>>, vector<1x128xf32>
      tpu.vector_store %arg4[%c0_22, %c0_23], %57 {strides = array<i32>} : memref<1x128xf32, #tpu.memory_space<vmem>>, vector<1x128xf32>,
    } else {
    }
    return
  }
  func.func @transform_0(%arg0: i32, %arg1: i32) -> (i32, i32) {
    %c1_i32 = arith.constant 1 : i32
    %0 = arith.muli %arg0, %c1_i32 : i32
    %1 = arith.addi %0, %arg1 : i32
    %c0_i32 = arith.constant 0 : i32
    %c0_i32_0 = arith.constant 0 : i32
    return %1, %c0_i32 : i32, i32
  }
  func.func @transform_1(%arg0: i32, %arg1: i32) -> (i32, i32) {
    %c1_i32 = arith.constant 1 : i32
    %0 = arith.muli %arg0, %c1_i32 : i32
    %1 = arith.addi %0, %arg1 : i32
    %c0_i32 = arith.constant 0 : i32
    %c0_i32_0 = arith.constant 0 : i32
    return %1, %c0_i32 : i32, i32
  }
  func.func @transform_2(%arg0: i32, %arg1: i32) -> (i32, i32) {
    %c0_i32 = arith.constant 0 : i32
    %c0_i32_0 = arith.constant 0 : i32
    return %c0_i32, %arg0 : i32, i32
  }
}

</mosaic_0001>

<bundles_post_ra>
// kernel: tpu_custom_call.1
= control target key start
LH: loop header
LB: loop body
LE: loop exit
PB: predicated region body
PF: predicated region fallthrough
CT: control target
= control target key end

     0   :  { %s880_s0 = inlined_call_operand.hbm [shape: f32[32,128], index: 0, kind: input, shape index: {}]   ;;  %s881_s1 = inlined_call_operand.hbm [shape: bf16[32,128], index: 1, kind: input, shape index: {}]   ;;  %s882_s2 = inlined_call_operand.hbm [shape: f32[1,256], index: 2, kind: output, shape index: {}]  }
   0x1   :  { %883 = sst [smem:[#allocation12_spill]] %s880_s0 }
   0x2   :  { %7 = vsyncpa [#allocation4], 0 }
   0x3   :  { %9 = vsyncpa [#allocation4 + $0x1], 0 }
   0x4   :  { %10 = vsyncpa [#allocation7], 0 }
   0x5   :  { %12 = vsyncpa [#allocation7 + $0x1], 0 }
   0x6   :  { %13 = vsyncpa [#allocation5], 0 }
   0x7   :  { %15 = vsyncpa [#allocation5 + $0x1], 0  ;;  %s722_s9 = smov 0   ;;  %s724_s10 = smov 0  }
   0x8   :  { %s726_s11 = smov 0   ;;  %s728_s12 = smov 0  }
   0x9   :  { %s730_s13 = smov 0   ;;  %s732_s14 = smov 0  }
   0xa LB: > { %s448_s15 = sadd.s32 4294967295, %s701_s14   ;;  %s449_s16 = sadd.s32 4294967294, %s701_s14   ;;  %s701_s14 = sphi %s732_s14, %s21_s14   ;;  %s697_s13 = sphi %s730_s13, %s894_s13   ;;  %s693_s12 = sphi %s728_s12, %s893_s12   ;;  %s689_s11 = sphi %s726_s11, %s892_s11   ;;  %s685_s10 = sphi %s724_s10, %s891_s10   ;;  %s681_s9 = sphi %s722_s9, %s890_s9  }
   0xb   : > { %s33_s17 = sadd.s32 1, %s697_s13  ;;  %s42_s18 = sadd.s32 1, %s689_s11 }
   0xc   : > { %p35_p0 = scmp.ge.s32.totalorder %s33_s17, 2  ;;  %p49_p1 = scmp.ne.s32.totalorder %s689_s11, %s685_s10 }
   0xd   : > { %p50_p2 = scmp.eq.s32.totalorder %s701_s14, 0  ;;  %p55_p3 = scmp.ne.s32.totalorder %s685_s10, %s681_s9 }
   0xe   : > { %s896_s17 = smov (%p35_p0, %s33_s17), 0  ;;  %p56_p5 = scmp.eq.s32.totalorder %s448_s15, 0 }
   0xf   : > { %p763_p4 = por %p50_p2, %p49_p1  ;;  %s39_s20 = ssub.s32 %s697_s13, %s896_s17 }
  0x10   : > { %p107_p6 = scmp.eq.s32.totalorder %s448_s15, 1  ;;  %p40_p7 = scmp.eq.s32.totalorder %s39_s20, 0 }
  0x11   : > { %p769_p8 = por %p56_p5, %p55_p3  ;;  %p113_p10 = scmp.eq.s32.totalorder %s449_s16, 1 }
  0x12   : > { %p773_p9 = por %p107_p6, %p49_p1  ;;  %p451_p12 = scmp.ge.s32.totalorder %s701_s14, 2 }
  0x13   : > { %s778_s23 = scalar_select %p40_p7, %s689_s11, %s42_s18  }
  0x14   : > { %p780_p11 = por %p113_p10, %p55_p3  ;;  %p489_p13 = scmp.lt.s32.totalorder %s701_s14, 2 }
  0x15   : > { %s787_s25 = sand.u32 1, %s689_s11   ;;  %s466_s27 = sshll.u32 %s697_s13, 4 }
  0x16   : > { %s452_s26 = sshll.u32 %s787_s25, 4  ;;  %s888_s0 = sld [smem:[#allocation12_spill]] }
  0x17   : > { %s137_s3 = scalar_lea.vmem [#allocation3], %s452_s26  ;;  %p796_p0 = pnand %p489_p13, %p763_p4 }
  0x18   : > { %s146_s4 = sshll.u32 %s137_s3, 4  ;;  %p458_p1 = scmp.ge.s32.totalorder %s701_s14, 1  ;;  %s147_s4 = int_to_ptr.vmem [resolvable:$true] %s146_s4 }
  0x19   : > { %s134_s7 = scalar_lea.sflag [#allocation4], %s787_s25  ;;  %s703_s8 = smov 128  }
  0x1a   : > { %s704_s15 = smov 8   ;;  %p177_p2 = scmp.lt.s32.totalorder %s701_s14, 3 }
  0x1b   : > { %s455_s16 = sshll.u32 %s787_s25, 3  ;;  %s467_s18 = sshll.u32 %s697_s13, 3 }
  0x1c   : > { %s143_s30 = scalar_lea.hbm %s888_s0, %s466_s27  ;;  %p178_p3 = pnand %p458_p1, %p177_p2 }
  0x1d   : > { %s144_s5 = sshll.u32 %s143_s30, 4  ;;  %s166_s19 = scalar_lea.hbm %s881_s1, %s467_s18  ;;  %s145_s5 = int_to_ptr.hbm [resolvable:$true] %s144_s5 }
  0x1e   : > { %481 = dma.hbm_to_vmem [thread:$0]  (!%p796_p0), %s145_s5, 256, %s147_s4, %s134_s7, %s703_s8, %s703_s8, %s704_s15  }
  0x1f   : > { %s160_s27 = scalar_lea.vmem [#allocation6], %s455_s16  ;;  %s167_s29 = sshll.u32 %s166_s19, 4  ;;  %s168_s29 = int_to_ptr.hbm [resolvable:$true] %s167_s29 }
  0x20   : > { %s169_s28 = sshll.u32 %s160_s27, 4  ;;  %s157_s30 = scalar_lea.sflag [#allocation7], %s787_s25  ;;  %s170_s28 = int_to_ptr.vmem [resolvable:$true] %s169_s28 }
  0x21   : > { %s705_s3 = smov 64   ;;  %s706_s0 = smov 4  }
  0x22   : > { %484 = dma.hbm_to_vmem [thread:$0]  (!%p796_p0), %s168_s29, 128, %s170_s28, %s157_s30, %s705_s3, %s705_s3, %s706_s0  }
  0x23   : > { %181 = sbr.rel (%p178_p3) target bundleno = 106 (0x6a), region = 28  ;;  %s814_s4 = sand.u32 (!%p178_p3), 1, %s685_s10  }
  0x24   : > { %s459_s5 = sshll.u32 (!%p178_p3), %s814_s4, 4  ;;  %s184_s7 = scalar_lea.sflag (!%p178_p3), [#allocation4], %s814_s4 }
  0x25   : > { %s187_s8 = scalar_lea.vmem (!%p178_p3), [#allocation3], %s459_s5 }
  0x28   : > { %668 = dma.done.wait (%p769_p8), %s184_s7, 256  }
  0x29   : > { %670 = vsyncadd (%p769_p8), %s184_s7, 4294967040  ;;  %s460_s25 = sshll.u32 %s814_s4, 3  ;;  %s194_s0 = scalar_lea.sflag [#allocation7], %s814_s4 }
  0x2a   : > { %s197_s6 = scalar_lea.vmem [#allocation6], %s460_s25 }
  0x2b   : > { %672 = dma.done.wait (%p769_p8), %s194_s0, 128  }
  0x2c   : > { %674 = vsyncadd (%p769_p8), %s194_s0, 4294967168  ;;  %v828_v0 = vld [vmem:[%s187_s8] sm:$0xff]  ;;  %v830_v1 = vld [vmem:[%s187_s8 + $0x8] sm:$0xff]  ;;  %v299_v24 = vlaneseq  ;;  %s463_s21 = sshll.u32 %s693_s12, 4  ;;  %s345_s18 = scalar_lea.hbm %s882_s2, %s693_s12 }
  0x2d   : > { %v239_v2 = vand.u32 2147483647, %v828_v0  ;;  %v240_v3 = vand.u32 2147483647, %v830_v1  ;;  %v469_v4 = vld [vmem:[%s197_s6] sm:$0xff]   ;;  %v265_v17 = vsub.f32 0.0, %v828_v0  ;;  %v304_v41 = vstv %s463_s21 }
  0x2e   : > { %v470_v9 = vunpack.c.l.bf16 %v469_v4  ;;  %v471_v10 = vunpack.c.h.bf16 %v469_v4  ;;  %v266_v21 = vsub.f32 0.0, %v830_v1  ;;  %v300_v31 = vshrl.u32 %v299_v24, 7  ;;  %s222_s20 = scalar_lea.vmem [#allocation8], %s814_s4  ;;  %s349_s19 = sshll.u32 %s345_s18, 4  ;;  %s350_s19 = int_to_ptr.hbm [resolvable:$true] %s349_s19 }
  0x2f   : > { %v241_v5 = vsub.f32 0.0, %v239_v2  ;;  %v242_v6 = vsub.f32 0.0, %v240_v3  ;;  %v289_v48 = vmax.f32 %v828_v0, 0.0  ;;  %v290_v52 = vmax.f32 %v830_v1, 0.0  ;;  %s347_s26 = sshll.u32 %s222_s20, 4  ;;  %s337_s27 = scalar_lea.sflag [#allocation5], %s814_s4  ;;  %s348_s26 = int_to_ptr.vmem [resolvable:$true] %s347_s26 }
  0x30   : > { %v267_v11 = vmul.f32 2.0, %v470_v9  ;;  %v268_v12 = vmul.f32 2.0, %v471_v10  ;;  %v301_v40 = vadd.s32 8, %v300_v31  ;;  %v305_v46 = vadd.s32 %v304_v41, %v300_v31  ;;  %s629_s28 = sshra.s32 %s350_s19, 4  ;;  %s635_s12 = scalar_lea.hbm %s882_s2, 2  ;;  %s630_s28 = int_to_ptr.hbm [resolvable:$true] %s629_s28 }
  0x31   : > { %v243_v7 = vmul.f32 1.442695, %v241_v5  ;;  %v245_v8 = vmul.f32 1.442695, %v242_v6  ;;  %v291_v49 = vmul.f32 %v470_v9, %v828_v0  ;;  %v292_v53 = vmul.f32 %v471_v10, %v830_v1  ;;  %s631_s29 = scalar_lea.hbm %s630_s28, 1  ;;  %p636_p7 = scmp.lt.s32.totalorder %s630_s28, %s882_s2 }
  0x32   : > { %v461_v18 = vadd.f32 -1.0, %v267_v11  ;;  %v462_v22 = vadd.f32 -1.0, %v268_v12  ;;  %v306_v50 = vadd.s32 %v304_v41, %v301_v40  ;;  %v277_v54 = vmul.f32 -1.0, %v470_v9  ;;  %p632_p4 = scmp.ne.s32.totalorder %s630_s28, %s631_s29  ;;  %p637_p8 = scmp.lt.s32.totalorder %s635_s12, %s631_s29 }
  0x33   : > { %543 = vpow2.f32 %v243_v7  ;;  %v278_v56 = vmul.f32 -1.0, %v471_v10  ;;  %v303_v57 = vand.u32 127, %v299_v24  ;;  %v307_v58 = vmul.u32 128, %v305_v46 }
  0x34   : > { %545 = vpow2.f32 %v245_v8  ;;  %v271_v27 = vmul.f32 %v461_v18, %v265_v17  ;;  %v272_v29 = vmul.f32 %v462_v22, %v266_v21  ;;  %v293_v59 = vsub.f32 %v289_v48, %v291_v49  ;;  %p633_p5 = pnand %p632_p4, %p773_p9  ;;  %p638_p10 = por %p637_p8, %p636_p7 }
  0x35   : > { %v308_v60 = vmul.u32 128, %v306_v50  ;;  %v294_v61 = vsub.f32 %v290_v52, %v292_v53  ;;  %v279_v62 = vadd.f32 1.5, %v277_v54  ;;  %v280_v63 = vadd.f32 1.5, %v278_v56 }
  0x36   : > { %v273_v34 = vmin.f32 %v271_v27, 0.0  ;;  %v274_v37 = vmin.f32 %v272_v29, 0.0  ;;  %v309_v2 = vadd.s32 %v307_v58, %v303_v57  ;;  %p634_p6 = pneg %p633_p5 }
  0x37   : > { %v310_v3 = vadd.s32 %v308_v60, %v303_v57 }
  0x38   : > { %vm313_vm2 = vcmp.lt.s32.totalorder %v309_v2, 1000  ;;  %p639_p13 = pnand %p638_p10, %p634_p6 }
  0x39   : > { %v544_v13 = vpop.eup %543  ;;  %vm314_vm3 = vcmp.lt.s32.totalorder %v310_v3, 1000 }
  0x3a   : > { %v546_v14 = vpop.eup %545  ;;  %v247_v15 = vadd.f32 1.0, %v544_v13  ;;  %v250_v16 = vmul.f32 -0.5, %v544_v13  ;;  %v253_v25 = vand.u32 2147483647, %v544_v13 }
  0x3b   : > { %v256_v19 = vadd.f32 1.0, %v546_v14  ;;  %v259_v20 = vmul.f32 -0.5, %v546_v14  ;;  %v262_v28 = vand.u32 2147483647, %v546_v14 }
  0x3c   : > { %547 = vlog2.f32 %v247_v15  ;;  %v251_v23 = vadd.f32 1.0, %v250_v16  ;;  %vm254_vm0 = vcmp.lt.f32.partialorder %v253_v25, 0.0004427343 }
  0x3d   : > { %549 = vlog2.f32 %v256_v19  ;;  %v260_v26 = vadd.f32 1.0, %v259_v20  ;;  %vm263_vm1 = vcmp.lt.f32.partialorder %v262_v28, 0.0004427343 }
  0x3e   : > { %v252_v30 = vmul.f32 %v544_v13, %v251_v23 }
  0x3f   : > { %v261_v33 = vmul.f32 %v546_v14, %v260_v26 }
  0x42   : > { %v548_v32 = vpop.eup %547 }
  0x43   : > { %v550_v35 = vpop.eup %549  ;;  %v249_v36 = vmul.f32 0.6931472, %v548_v32 }
  0x44   : > { %v258_v38 = vmul.f32 0.6931472, %v550_v35 }
  0x45   : > { %v255_v39 = vsel %vm254_vm0, %v252_v30, %v249_v36 }
  0x46   : > { %v264_v42 = vsel %vm263_vm1, %v261_v33, %v258_v38  ;;  %v275_v43 = vsub.f32 %v273_v34, %v255_v39  ;;  %v295_v0 = vadd.f32 %v293_v59, %v255_v39 }
  0x47   : > { %v276_v44 = vsub.f32 %v274_v37, %v264_v42  ;;  %v296_v5 = vadd.f32 %v294_v61, %v264_v42 }
  0x48   : > { %v281_v45 = vmul.f32 2.0, %v275_v43 }
  0x49   : > { %v282_v47 = vmul.f32 2.0, %v276_v44 }
  0x4a   : > { %v283_v51 = vmul.f32 1.442695, %v281_v45 }
  0x4b   : > { %v285_v55 = vmul.f32 1.442695, %v282_v47 }
  0x4c   : > { %551 = vpow2.f32 %v283_v51 }
  0x4d   : > { %553 = vpow2.f32 %v285_v55 }
  0x52   : > { %v552_v4 = vpop.eup %551 }
  0x53   : > { %v554_v1 = vpop.eup %553  ;;  %v287_v6 = vmul.f32 %v552_v4, %v279_v62 }
  0x54   : > { %v288_v7 = vmul.f32 %v554_v1, %v280_v63 }
  0x55   : > { %v315_v8 = vmul.f32 %v295_v0, %v287_v6 }
  0x56   : > { %v316_v9 = vmul.f32 %v296_v5, %v288_v7 }
  0x57   : > { %v317_v10 = vsel %vm313_vm2, %v315_v8, 0.0 }
  0x58   : > { %v318_v11 = vsel %vm314_vm3, %v316_v9, 0.0 }
  0x59   : > { %v328_v12 = vadd.f32 %v318_v11, %v317_v10 }
  0x5b   : > { %v329_v13 = vrot.slane %v328_v12, 4 }
  0x5d   : > { %v330_v14 = vadd.f32 %v329_v13, %v328_v12 }
  0x5f   : > { %v331_v15 = vrot.slane %v330_v14, 2 }
  0x61   : > { %v332_v16 = vadd.f32 %v331_v15, %v330_v14 }
  0x63   : > { %v333_v17 = vrot.slane %v332_v16, 1 }
  0x65   : > { %v334_v18 = vadd.f32 %v333_v17, %v332_v16 }
  0x67   : > { %335 = vst [vmem:[%s222_s20] sm:$0x1] %v334_v18 }
  0x68   : > { %642 = shalt.err (!%p639_p13)
}
  0x69   : > { %476 = dma.vmem_to_hbm [thread:$0]  (%p773_p9), %s348_s26, 16, %s350_s19, %s337_s27  }
  0x6a PF: > { %s361_s4 = sand.u32 1, %s681_s9   ;;  %p486_p0 = pnand %p451_p12, %p780_p11 }
  0x6b   : > { %s362_s8 = scalar_lea.sflag [#allocation5], %s361_s4 }
  0x6c   : > { %p487_p1 = pneg %p486_p0 }
  0x6e   : > { %676 = dma.done.wait (%p487_p1), %s362_s8, 16  }
  0x6f   : > { %678 = vsyncadd (%p487_p1), %s362_s8, 4294967280  ;;  %s21_s14 = sadd.s32 1, %s701_s14   ;;  %s890_s9 = smov %s685_s10 }
  0x70   : > { %p18_p2 = scmp.ge.s32.totalorder %s21_s14, 4   ;;  %s891_s10 = smov %s689_s11 }
  0x71   : > { %s892_s11 = smov %s778_s23  ;;  %s893_s12 = smov %s697_s13 }
  0x72   : > { %s894_s13 = smov %s896_s17  ;;  %20 = sbr.rel (!%p18_p2) target bundleno = 10 (0xa), region = 94 }
  0x77   :  { %367 = vsyncpa [#allocation4], 1 }
  0x78   :  { %369 = vsyncpa [#allocation4 + $0x1], 1 }
  0x79   :  { %370 = vsyncpa [#allocation7], 1 }
  0x7a   :  { %372 = vsyncpa [#allocation7 + $0x1], 1 }
  0x7b   :  { %373 = vsyncpa [#allocation5], 1 }
  0x7c   :  { %375 = vsyncpa [#allocation5 + $0x1], 1 }

</bundles_post_ra>
